<compile_context>
chip_gen: v7x
topology: tpu7x:2x2x1
jax: 0.10.0
libtpu: 0.0.40
codegen_flags: <defaults>
</compile_context>

<pallas_src>
import math

import jax
import jax.numpy as jnp
from jax.experimental import pallas as pl
from jax.experimental.pallas import tpu as pltpu

LANES = 128
DEFAULT_LANE_WIDTH = 512      # lane-dense last dim (multiple of 128)
DEFAULT_TILE_ROWS = 1024      # 1024 * 512 * 4B = 2 MiB per f32 block
MIN_PALLAS_BYTES = 1 << 20    # below ~1 MiB, fused XLA elementwise wins


def _round_up(x: int, m: int) -> int:
    return ((x + m - 1) // m) * m


def _sublane_granule(*dtypes) -> int:
    # f32 -> 8 rows, bf16 -> 16, int8/fp8 -> 32 (sub-32-bit packs along sublanes)
    g = 8
    for dt in dtypes:
        g = max(g, 32 // max(jnp.dtype(dt).itemsize, 1))
    return g


def _poly3_kernel(coef_ref, x_ref, o_ref):
    # coef_ref: SMEM (4,) f32 via scalar prefetch -> a, b, c, d.
    # Read once per invocation so the scalar->vector broadcasts aren't repeated.
    a = coef_ref[0]
    b = coef_ref[1]
    c = coef_ref[2]
    d = coef_ref[3]
    # Load in the storage dtype, compute in f32 (narrow inputs move fewer HBM bytes).
    x = x_ref[...].astype(jnp.float32)
    # Horner: a + x*(b + x*(c + x*d))
    y = a + x * (b + x * (c + x * d))
    o_ref[...] = y.astype(o_ref.dtype)


def polynomial3_forward(x, a, b, c, d, *,
                        lane_width: int = DEFAULT_LANE_WIDTH,
                        tile_rows: int = DEFAULT_TILE_ROWS,
                        min_pallas_bytes: int = MIN_PALLAS_BYTES,
                        force_pallas: bool = False):
    """Elementwise cubic polynomial; semantics match the torch module forward."""
    assert lane_width % LANES == 0

    orig_shape = x.shape
    in_dtype = x.dtype
    # Torch promotes int tensors against float parameters -> float32 output.
    out_dtype = in_dtype if jnp.issubdtype(in_dtype, jnp.floating) else jnp.float32

    coefs = jnp.stack(
        [jnp.asarray(a), jnp.asarray(b), jnp.asarray(c), jnp.asarray(d)]
    ).astype(jnp.float32)

    flat = x.reshape(-1)
    n = flat.shape[0]
    if n == 0:
        return jnp.zeros(orig_shape, out_dtype)

    nbytes = n * jnp.dtype(in_dtype).itemsize
    if (not force_pallas) and nbytes < min_pallas_bytes:
        # Small-input fallback: a single fused XLA elementwise op beats the
        # pallas_call launch + pipeline setup at these sizes.
        xf = x.astype(jnp.float32)
        y = coefs[0] + xf * (coefs[1] + xf * (coefs[2] + xf * coefs[3]))
        return y.astype(out_dtype)

    granule = _sublane_granule(in_dtype, out_dtype)
    tile_rows = _round_up(tile_rows, granule)

    # Lane-dense slab: (rows, lane_width). No row round-up to tile multiples —
    # Pallas handles the ragged final block (clamped boundary DMAs).
    rows = pl.cdiv(n, lane_width)
    n_pad = rows * lane_width
    if n_pad != n:
        # TODO(synk): lane-unaligned sizes still pay one pad copy (and one
        # output slice). A fully pad-free path needs a 1-D block layout with an
        # in-kernel masked tail store (pltpu.store(..., mask=...)); lane-aligned
        # inputs skip this branch entirely.
        flat = jnp.pad(flat, (0, n_pad - n))
    x2d = flat.reshape(rows, lane_width)

    # Tile selection: big blocks for bandwidth, but keep >= 2 grid blocks when
    # possible so both v7x TensorCores get work under "parallel" semantics.
    if rows <= tile_rows:
        if rows >= 2 * granule:
            tile_rows = _round_up(pl.cdiv(rows, 2), granule)   # -> grid of 2
        else:
            tile_rows = rows   # single tiny block equal to the full row dim
    grid = (pl.cdiv(rows, tile_rows),)

    out2d = pl.pallas_call(
        _poly3_kernel,
        out_shape=jax.ShapeDtypeStruct((rows, lane_width), out_dtype),
        grid_spec=pltpu.PrefetchScalarGridSpec(
            num_scalar_prefetch=1,   # coefficients -> SMEM once, before the grid
            grid=grid,
            in_specs=[
                pl.BlockSpec((tile_rows, lane_width), lambda i, coef: (i, 0)),
            ],
            out_specs=pl.BlockSpec((tile_rows, lane_width), lambda i, coef: (i, 0)),
        ),
        compiler_params=pltpu.CompilerParams(
            dimension_semantics=("parallel",),
            # 2 MiB blocks -> ~8 MiB double-buffered: fits every generation's
            # default scoped-VMEM limit, so no vmem_limit_bytes override needed.
        ),
    )(coefs, x2d)

    out = out2d.reshape(-1)
    if n_pad != n:
        out = out[:n]
    return out.reshape(orig_shape)


if __name__ == "__main__":
    key = jax.random.PRNGKey(0)
    ka, kb, kc, kd, kx1, kx2 = jax.random.split(key, 6)
    a = jax.random.normal(ka, (), dtype=jnp.float32)
    b = jax.random.normal(kb, (), dtype=jnp.float32)
    c = jax.random.normal(kc, (), dtype=jnp.float32)
    d = jax.random.normal(kd, (), dtype=jnp.float32)

    def ref_poly(x):
        # Same association as the torch forward.
        return a + b * x + c * x ** 2 + d * x ** 3

    # 1) The tutorial's input (2000 elements): small -> plain-jnp fallback path.
    x_small = jnp.linspace(-math.pi, math.pi, 2000, dtype=jnp.float32)
    y_small = jax.block_until_ready(polynomial3_forward(x_small, a, b, c, d))
    assert y_small.shape == x_small.shape and y_small.dtype == x_small.dtype
    assert jnp.allclose(y_small, ref_poly(x_small), atol=1e-4, rtol=1e-4)

    # 2) Same input forced through the Pallas kernel (single small padded block).
    y_forced = jax.block_until_ready(
        polynomial3_forward(x_small, a, b, c, d, force_pallas=True))
    assert y_forced.shape == x_small.shape and y_forced.dtype == x_small.dtype
    assert jnp.allclose(y_forced, ref_poly(x_small), atol=1e-4, rtol=1e-4)

    # 3) Lane-unaligned 2-D input on the natural Pallas path
    #    (2 grid blocks, ragged final block).
    x_u = jax.random.uniform(kx1, (560, 560), dtype=jnp.float32,
                             minval=-math.pi, maxval=math.pi)
    y_u = jax.block_until_ready(polynomial3_forward(x_u, a, b, c, d))
    assert y_u.shape == x_u.shape and y_u.dtype == x_u.dtype
    assert jnp.allclose(y_u, ref_poly(x_u), atol=1e-4, rtol=1e-4)

    # 4) Lane-aligned input: no wrapper pad / slice at all (2 exact blocks).
    x_a = jax.random.uniform(kx2, (512, 1024), dtype=jnp.float32,
                             minval=-math.pi, maxval=math.pi)
    y_a = jax.block_until_ready(polynomial3_forward(x_a, a, b, c, d))
    assert y_a.shape == x_a.shape and y_a.dtype == x_a.dtype
    assert jnp.allclose(y_a, ref_poly(x_a), atol=1e-4, rtol=1e-4)

    print("KERNEL_OK")
</pallas_src>

<mosaic_0001>
module attributes {stable_mosaic.version = 11 : i64} {
  func.func @_poly3_kernel(%arg0: i32, %arg1: memref<4xf32, #tpu.memory_space<smem>>, %arg2: memref<4x512xf32, #tpu.memory_space<vmem>>, %arg3: memref<4x512xf32, #tpu.memory_space<vmem>>) attributes {dimension_semantics = [#tpu.dimension_semantics<parallel>], iteration_bounds = array<i64: 1>, scalar_prefetch = 1 : i64, scratch_operands = 0 : i64, tpu.core_type = #tpu.core_type<tc>, window_params = [{transform_indices = @transform_0, window_bounds = array<i64: 4, 512>}, {transform_indices = @transform_1, window_bounds = array<i64: 4, 512>}]} {
    %c0 = arith.constant 0 : index
    %0 = memref.load %arg1[%c0] : memref<4xf32, #tpu.memory_space<smem>>
    %c1 = arith.constant 1 : index
    %1 = memref.load %arg1[%c1] : memref<4xf32, #tpu.memory_space<smem>>
    %c2 = arith.constant 2 : index
    %2 = memref.load %arg1[%c2] : memref<4xf32, #tpu.memory_space<smem>>
    %c3 = arith.constant 3 : index
    %3 = memref.load %arg1[%c3] : memref<4xf32, #tpu.memory_space<smem>>
    %c0_0 = arith.constant 0 : index
    %c0_1 = arith.constant 0 : index
    %4 = vector.load %arg2[%c0_0, %c0_1] : memref<4x512xf32, #tpu.memory_space<vmem>>, vector<4x512xf32>
    %5 = vector.broadcast %3 : f32 to vector<4x512xf32>
    %6 = arith.mulf %4, %5 : vector<4x512xf32>
    %7 = vector.broadcast %2 : f32 to vector<4x512xf32>
    %8 = arith.addf %7, %6 : vector<4x512xf32>
    %9 = arith.mulf %4, %8 : vector<4x512xf32>
    %10 = vector.broadcast %1 : f32 to vector<4x512xf32>
    %11 = arith.addf %10, %9 : vector<4x512xf32>
    %12 = arith.mulf %4, %11 : vector<4x512xf32>
    %13 = vector.broadcast %0 : f32 to vector<4x512xf32>
    %14 = arith.addf %13, %12 : vector<4x512xf32>
    %c0_2 = arith.constant 0 : index
    %c0_3 = arith.constant 0 : index
    %15 = vector.load %arg3[%c0_2, %c0_3] : memref<4x512xf32, #tpu.memory_space<vmem>>, vector<4x512xf32>
    tpu.vector_store %arg3[%c0_2, %c0_3], %14 {strides = array<i32>} : memref<4x512xf32, #tpu.memory_space<vmem>>, vector<4x512xf32>,
    return
  }
  func.func @transform_0(%arg0: i32, %arg1: memref<4xf32, #tpu.memory_space<smem>>) -> (i32, i32) {
    %c0_i32 = arith.constant 0 : i32
    %c0_i32_0 = arith.constant 0 : i32
    return %arg0, %c0_i32 : i32, i32
  }
  func.func @transform_1(%arg0: i32, %arg1: memref<4xf32, #tpu.memory_space<smem>>) -> (i32, i32) {
    %c0_i32 = arith.constant 0 : i32
    %c0_i32_0 = arith.constant 0 : i32
    return %arg0, %c0_i32 : i32, i32
  }
}

</mosaic_0001>

<bundles_post_ra>
// kernel: tpu_custom_call.1
= control target key start
LH: loop header
LB: loop body
LE: loop exit
PB: predicated region body
PF: predicated region fallthrough
CT: control target
= control target key end

     0   :  { %s185_s0 = inlined_call_operand.hbm [shape: f32[4], index: 0, kind: input, shape index: {}]   ;;  %s186_s1 = inlined_call_operand.hbm [shape: f32[4,512], index: 1, kind: input, shape index: {}]   ;;  %s187_s2 = inlined_call_operand.hbm [shape: f32[4,512], index: 2, kind: output, shape index: {}]  }
   0x1   :  { %s71_s11 = scalar_lea.hbm %s185_s0, 16 }
   0x2   :  { %p72_p0 = scmp.ne.s32.totalorder %s185_s0, %s71_s11  ;;  %p75_p1 = scmp.lt.u32.totalorder %s71_s11, %s185_s0 }
   0x4   :  { %p77_p2 = pnand %p75_p1, %p72_p0 }
   0x6   :  { %80 = shalt.err (!%p77_p2)  }
   0x7   :  { %s131_s16 = smov [#allocation3]  }
   0x8   :  { %8 = dma.hbm_to_smem %s185_s0, 16, %s131_s16, [#allocation2] }
   0x9   :  { %125 = dma.done.wait [#allocation2], 16 }
   0xa   :  { %126 = vsyncadd [#allocation2], 4294967280 }
   0xb   :  { %10 = sfence }
   0xc   :  { %11 = vsyncpa [#allocation5], 0 }
   0xd   :  { %12 = vsyncpa [#allocation6], 0  ;;  %s132_s19 = smov [#allocation4]   ;;  %s81_s23 = scalar_lea.hbm %s186_s1, 256 }
   0xe   :  { %s19_s20 = sshll.u32 %s132_s19, 4  ;;  %p82_p3 = scmp.ne.s32.totalorder %s186_s1, %s81_s23  ;;  %s20_s20 = int_to_ptr.vmem [resolvable:$true] %s19_s20 }
   0xf   :  { %p85_p4 = scmp.lt.u32.totalorder %s81_s23, %s186_s1 }
  0x11   :  { %p87_p5 = pnand %p85_p4, %p82_p3 }
  0x13   :  { %90 = shalt.err (!%p87_p5)
}
  0x14   :  { %s91_s0 = scalar_lea.vmem %s20_s20, 256  ;;  %p96_p7 = scmp.lt.s32.totalorder %s20_s20, %s20_s20 }
  0x15   :  { %p92_p6 = scmp.ne.s32.totalorder %s20_s20, %s91_s0  ;;  %p97_p8 = scmp.lt.s32.totalorder %s91_s0, %s91_s0 }
  0x17   :  { %p98_p9 = por %p97_p8, %p96_p7 }
  0x19   :  { %p99_p10 = pnand %p98_p9, %p92_p6 }
  0x1b   :  { %102 = shalt.err (!%p99_p10)
}
  0x1c   :  { %22 = dma.hbm_to_vmem [thread:$0]  %s186_s1, 256, %s20_s20, [#allocation5]  }
  0x1d   :  { %127 = dma.done.wait [#allocation5], 256  }
  0x1e   :  { %128 = vsyncadd [#allocation5], 4294967040  ;;  %s66_s30 = sld [smem:[#allocation3 + $0x2]]  ;;  %s67_s3 = sld [smem:[#allocation3 + $0x3]]  ;;  %v30_v0 = vld [vmem:[#allocation4] sm:$0xff]  ;;  %v31_v1 = vld [vmem:[#allocation4 + $0x8] sm:$0xff] }
  0x1f   :  { %s65_s4 = sld [smem:[#allocation3 + $0x1]]  ;;  %s26_s5 = sld [smem:[#allocation3]] }
  0x20   :  { %s133_s1 = smov [#allocation7]  }
  0x21   :  { %s56_s6 = sshll.u32 %s133_s1, 4  ;;  %s57_s6 = int_to_ptr.vmem [resolvable:$true] %s56_s6 }
  0x22   :  { %s103_s7 = scalar_lea.vmem %s57_s6, 256  ;;  %p108_p12 = scmp.lt.s32.totalorder %s57_s6, %s57_s6 }
  0x23   :  { %p104_p11 = scmp.ne.s32.totalorder %s57_s6, %s103_s7  ;;  %p109_p13 = scmp.lt.s32.totalorder %s103_s7, %s103_s7 }
  0x24   :  { %v32_v2 = vstv %s67_s3  ;;  %v35_v3 = vstv %s66_s30 }
  0x25   :  { %v33_v4 = vmul.f32 %v32_v2, %v30_v0  ;;  %v34_v5 = vmul.f32 %v32_v2, %v31_v1  ;;  %v40_v8 = vstv %s65_s4  ;;  %v45_v13 = vstv %s26_s5  ;;  %p110_p0 = por %p109_p13, %p108_p12 }
  0x27   :  { %v36_v6 = vadd.f32 %v35_v3, %v33_v4  ;;  %v37_v7 = vadd.f32 %v35_v3, %v34_v5  ;;  %p111_p1 = pnand %p110_p0, %p104_p11 }
  0x29   :  { %v38_v9 = vmul.f32 %v36_v6, %v30_v0  ;;  %v39_v10 = vmul.f32 %v37_v7, %v31_v1 }
  0x2b   :  { %v41_v11 = vadd.f32 %v40_v8, %v38_v9  ;;  %v42_v12 = vadd.f32 %v40_v8, %v39_v10 }
  0x2d   :  { %v43_v14 = vmul.f32 %v41_v11, %v30_v0  ;;  %v44_v15 = vmul.f32 %v42_v12, %v31_v1 }
  0x2f   :  { %v46_v16 = vadd.f32 %v45_v13, %v43_v14  ;;  %v47_v17 = vadd.f32 %v45_v13, %v44_v15 }
  0x31   :  { %48 = vst [vmem:[#allocation7] sm:$0xff] %v46_v16  ;;  %49 = vst [vmem:[#allocation7 + $0x8] sm:$0xff] %v47_v17 }
  0x32   :  { %114 = shalt.err (!%p111_p1)
}
  0x33   :  { %s115_s10 = scalar_lea.hbm %s187_s2, 256 }
  0x34   :  { %p116_p2 = scmp.ne.s32.totalorder %s187_s2, %s115_s10  ;;  %p119_p3 = scmp.lt.u32.totalorder %s115_s10, %s187_s2 }
  0x36   :  { %p121_p4 = pnand %p119_p3, %p116_p2 }
  0x38   :  { %124 = shalt.err (!%p121_p4)
}
  0x39   :  { %59 = dma.vmem_to_hbm [thread:$0]  %s57_s6, 256, %s187_s2, [#allocation6]  }
  0x3a   :  { %129 = dma.done.wait [#allocation6], 256  }
  0x3b   :  { %130 = vsyncadd [#allocation6], 4294967040 }
  0x3c   :  { %63 = vsyncpa [#allocation5], 1 }
  0x3d   :  { %64 = vsyncpa [#allocation6], 1 }

</bundles_post_ra>
